<compile_context>
chip_gen: v7x
topology: tpu7x:2x2x1
jax: 0.10.0
libtpu: 0.0.40
codegen_flags: <defaults>
</compile_context>

<pallas_src>
import jax
import jax.numpy as jnp
from jax.experimental import pallas as pl
from jax.experimental.pallas import tpu as pltpu


def fm_kernel(w_ref, b_ref, cand_idx_ref, clicked_idx_ref,
              cand_feat_ref, clicked_feat_ref, out_ref):
    """One batch tile in batch-last (lane-dense) layout.

    Block shapes (TB = batch tile on the lane axis):
      w_ref            (C+1,)      SMEM  nn.Linear weight (entry 0 = candidate column)
      b_ref            (1,)        SMEM  nn.Linear bias
      cand_idx_ref     (S, TB)     VMEM
      clicked_idx_ref  (C, TB)     VMEM
      cand_feat_ref    (S, D, TB)  VMEM
      clicked_feat_ref (C, D, TB)  VMEM
      out_ref          (S, TB)     VMEM
    """
    C = clicked_feat_ref.shape[0]
    S = cand_feat_ref.shape[0]

    # Clicked-field sums, shared by every candidate sample in this tile.
    x0 = clicked_feat_ref[0]                                   # (D, TB)
    clicked_sum = x0
    clicked_sq = x0 * x0
    for c in range(1, C):
        xc = clicked_feat_ref[c]
        clicked_sum = clicked_sum + xc
        clicked_sq = clicked_sq + xc * xc

    # Linear part over clicked indices + bias; weights read as SMEM scalars.
    lin = clicked_idx_ref[0:1, :] * w_ref[1] + b_ref[0]        # (1, TB)
    for c in range(1, C):
        lin = lin + clicked_idx_ref[c:c + 1, :] * w_ref[c + 1]
    w0 = w_ref[0]

    # Per candidate sample: FM = 0.5 * sum_D[(sum_f x)^2 - sum_f x^2].
    for s in range(S):
        cf = cand_feat_ref[s]                                  # (D, TB)
        tot = clicked_sum + cf
        fm_s = 0.5 * jnp.sum(tot * tot - clicked_sq - cf * cf,
                             axis=0, keepdims=True)            # (1, TB)
        out_ref[s:s + 1, :] = cand_idx_ref[s:s + 1, :] * w0 + lin + fm_s


def _pick_batch_tile(batch, s, c, d, vmem_budget_bytes):
    """Largest lane-dense batch tile whose double-buffered blocks fit the budget."""
    # f32 bytes per batch element (lane) for inputs + output of one block.
    per_lane = 4 * (s + c + s * d + c * d + s)
    max_tb = max(128, int(vmem_budget_bytes // (2 * per_lane)))   # 2x: double buffering
    if batch <= 128:
        return batch                      # full-extent lane block, single grid step
    tb = min(batch, max_tb)
    return max(128, (tb // 128) * 128)    # lane-dense: multiple of 128


def fm_forward(cand_idx, clicked_idx, cand_feat, clicked_feat, w, b,
               *, max_block_b=None, vmem_budget_bytes=24 * 1024 * 1024):
    B, S = cand_idx.shape
    C = clicked_idx.shape[1]
    D = cand_feat.shape[-1]

    # Lane-dense layout: batch on the last (128-lane) axis.
    # TODO(synk): in production the upstream producer should emit this layout
    # directly so these transposes disappear.
    cand_idx_t = cand_idx.T.astype(jnp.float32)                                  # (S, B)
    clicked_idx_t = clicked_idx.T.astype(jnp.float32)                            # (C, B)
    cand_feat_t = jnp.transpose(cand_feat, (1, 2, 0)).astype(jnp.float32)        # (S, D, B)
    clicked_feat_t = jnp.transpose(clicked_feat, (1, 2, 0)).astype(jnp.float32)  # (C, D, B)
    w_flat = w.reshape(-1).astype(jnp.float32)                                   # (C+1,)
    b_flat = b.reshape(-1).astype(jnp.float32)                                   # (1,)

    # Batch tile: full-extent for small B, otherwise a multiple of 128 lanes
    # sized against the (v7x-safe) VMEM budget.
    tb = _pick_batch_tile(B, S, C, D, vmem_budget_bytes)
    if max_block_b is not None:
        tb = min(tb, max_block_b)
    if tb >= B:
        tb = B
    else:
        tb = max(128, (tb // 128) * 128)

    num_blocks = -(-B // tb)
    Bp = num_blocks * tb
    if Bp != B:
        pad = Bp - B
        cand_idx_t = jnp.pad(cand_idx_t, ((0, 0), (0, pad)))
        clicked_idx_t = jnp.pad(clicked_idx_t, ((0, 0), (0, pad)))
        cand_feat_t = jnp.pad(cand_feat_t, ((0, 0), (0, 0), (0, pad)))
        clicked_feat_t = jnp.pad(clicked_feat_t, ((0, 0), (0, 0), (0, pad)))

    out_t = pl.pallas_call(
        fm_kernel,
        out_shape=jax.ShapeDtypeStruct((S, Bp), jnp.float32),
        grid=(num_blocks,),
        in_specs=[
            pl.BlockSpec(memory_space=pltpu.MemorySpace.SMEM),          # w
            pl.BlockSpec(memory_space=pltpu.MemorySpace.SMEM),          # b
            pl.BlockSpec((S, tb), lambda i: (0, i)),                    # cand_idx
            pl.BlockSpec((C, tb), lambda i: (0, i)),                    # clicked_idx
            pl.BlockSpec((S, D, tb), lambda i: (0, 0, i)),              # cand_feat
            pl.BlockSpec((C, D, tb), lambda i: (0, 0, i)),              # clicked_feat
        ],
        out_specs=pl.BlockSpec((S, tb), lambda i: (0, i)),
        compiler_params=pltpu.CompilerParams(
            dimension_semantics=("parallel",),
            vmem_limit_bytes=32 * 1024 * 1024,
        ),
    )(w_flat, b_flat, cand_idx_t, clicked_idx_t, cand_feat_t, clicked_feat_t)

    return out_t[:, :B].T                                               # (B, S)


def ref_forward(cand_idx, clicked_idx, cand_feat, clicked_feat, w, b):
    """Pure-JAX mirror of the PyTorch loop, for correctness checking."""
    B, S = cand_idx.shape
    scores = []
    for i in range(S):
        feature = jnp.concatenate([cand_feat[:, i:i + 1, :], clicked_feat], axis=1)
        newindex = jnp.concatenate([cand_idx[:, i:i + 1], clicked_idx], axis=1)
        lin = newindex @ w.T + b                                        # (B, 1)
        sq_of_sum = jnp.sum(feature, axis=1) ** 2                       # (B, D)
        sum_of_sq = jnp.sum(feature ** 2, axis=1)                       # (B, D)
        fm = 0.5 * jnp.sum(sq_of_sum - sum_of_sq, axis=1, keepdims=True)
        scores.append(lin + fm)
    return jnp.concatenate(scores, axis=1)


if __name__ == "__main__":
    # Small shapes consistent with the module's forward:
    #   batch=2, sample_num=4, user_clicked_new_num=8, feature/embed dim=32
    B, S, C, D = 2, 4, 8, 32

    key = jax.random.PRNGKey(0)
    k1, k2, k3, k4, k5, k6 = jax.random.split(key, 6)

    # Indices are consumed by nn.Linear in PyTorch, so they are float tensors.
    cand_idx = jax.random.randint(k1, (B, S), 0, 100).astype(jnp.float32)
    clicked_idx = jax.random.randint(k2, (B, C), 0, 100).astype(jnp.float32)
    cand_feat = jax.random.normal(k3, (B, S, D), dtype=jnp.float32)
    clicked_feat = jax.random.normal(k4, (B, C, D), dtype=jnp.float32)

    # Deterministic nn.Linear(C+1, 1) parameters (uniform init, synthetic).
    bound = 1.0 / jnp.sqrt(C + 1.0)
    w = jax.random.uniform(k5, (1, C + 1), minval=-bound, maxval=bound,
                           dtype=jnp.float32)
    b = jax.random.uniform(k6, (1, 1), minval=-bound, maxval=bound,
                           dtype=jnp.float32)

    out = jax.block_until_ready(
        fm_forward(cand_idx, clicked_idx, cand_feat, clicked_feat, w, b))
    ref = ref_forward(cand_idx, clicked_idx, cand_feat, clicked_feat, w, b)
    assert out.shape == (B, S), out.shape
    assert jnp.allclose(out, ref, rtol=1e-4, atol=1e-4), (out, ref)

    # Larger batch: exercises the batch-tiled grid (multiple "parallel" steps)
    # and the lane-padding path (B not a multiple of the 128-lane tile).
    B2 = 300
    kk = jax.random.split(jax.random.PRNGKey(1), 4)
    cand_idx2 = jax.random.randint(kk[0], (B2, S), 0, 100).astype(jnp.float32)
    clicked_idx2 = jax.random.randint(kk[1], (B2, C), 0, 100).astype(jnp.float32)
    cand_feat2 = jax.random.normal(kk[2], (B2, S, D), dtype=jnp.float32)
    clicked_feat2 = jax.random.normal(kk[3], (B2, C, D), dtype=jnp.float32)
    out2 = jax.block_until_ready(
        fm_forward(cand_idx2, clicked_idx2, cand_feat2, clicked_feat2, w, b,
                   max_block_b=128))
    ref2 = ref_forward(cand_idx2, clicked_idx2, cand_feat2, clicked_feat2, w, b)
    assert out2.shape == (B2, S), out2.shape
    assert jnp.allclose(out2, ref2, rtol=1e-4, atol=1e-4)

    print("KERNEL_OK")
</pallas_src>

<mosaic_0001>
module attributes {stable_mosaic.version = 11 : i64} {
  func.func @fm_kernel(%arg0: i32, %arg1: memref<9xf32, #tpu.memory_space<smem>>, %arg2: memref<1xf32, #tpu.memory_space<smem>>, %arg3: memref<4x2xf32, #tpu.memory_space<vmem>>, %arg4: memref<8x2xf32, #tpu.memory_space<vmem>>, %arg5: memref<4x32x2xf32, #tpu.memory_space<vmem>>, %arg6: memref<8x32x2xf32, #tpu.memory_space<vmem>>, %arg7: memref<4x2xf32, #tpu.memory_space<vmem>>) attributes {dimension_semantics = [#tpu.dimension_semantics<parallel>], iteration_bounds = array<i64: 1>, scalar_prefetch = 0 : i64, scratch_operands = 0 : i64, tpu.core_type = #tpu.core_type<tc>, window_params = [{transform_indices = @transform_0, window_bounds = array<i64: 9>}, {transform_indices = @transform_1, window_bounds = array<i64: 1>}, {transform_indices = @transform_2, window_bounds = array<i64: 4, 2>}, {transform_indices = @transform_3, window_bounds = array<i64: 8, 2>}, {transform_indices = @transform_4, window_bounds = array<i64: 4, 32, 2>}, {transform_indices = @transform_5, window_bounds = array<i64: 8, 32, 2>}, {transform_indices = @transform_6, window_bounds = array<i64: 4, 2>}]} {
    %c0 = arith.constant 0 : index
    %c0_0 = arith.constant 0 : index
    %c0_1 = arith.constant 0 : index
    %0 = vector.load %arg6[%c0, %c0_0, %c0_1] : memref<8x32x2xf32, #tpu.memory_space<vmem>>, vector<1x32x2xf32>
    %1 = vector.shape_cast %0 : vector<1x32x2xf32> to vector<32x2xf32>
    %2 = arith.mulf %1, %1 : vector<32x2xf32>
    %c1 = arith.constant 1 : index
    %c0_2 = arith.constant 0 : index
    %c0_3 = arith.constant 0 : index
    %3 = vector.load %arg6[%c1, %c0_2, %c0_3] : memref<8x32x2xf32, #tpu.memory_space<vmem>>, vector<1x32x2xf32>
    %4 = vector.shape_cast %3 : vector<1x32x2xf32> to vector<32x2xf32>
    %5 = arith.addf %1, %4 : vector<32x2xf32>
    %6 = arith.mulf %4, %4 : vector<32x2xf32>
    %7 = arith.addf %2, %6 : vector<32x2xf32>
    %c2 = arith.constant 2 : index
    %c0_4 = arith.constant 0 : index
    %c0_5 = arith.constant 0 : index
    %8 = vector.load %arg6[%c2, %c0_4, %c0_5] : memref<8x32x2xf32, #tpu.memory_space<vmem>>, vector<1x32x2xf32>
    %9 = vector.shape_cast %8 : vector<1x32x2xf32> to vector<32x2xf32>
    %10 = arith.addf %5, %9 : vector<32x2xf32>
    %11 = arith.mulf %9, %9 : vector<32x2xf32>
    %12 = arith.addf %7, %11 : vector<32x2xf32>
    %c3 = arith.constant 3 : index
    %c0_6 = arith.constant 0 : index
    %c0_7 = arith.constant 0 : index
    %13 = vector.load %arg6[%c3, %c0_6, %c0_7] : memref<8x32x2xf32, #tpu.memory_space<vmem>>, vector<1x32x2xf32>
    %14 = vector.shape_cast %13 : vector<1x32x2xf32> to vector<32x2xf32>
    %15 = arith.addf %10, %14 : vector<32x2xf32>
    %16 = arith.mulf %14, %14 : vector<32x2xf32>
    %17 = arith.addf %12, %16 : vector<32x2xf32>
    %c4 = arith.constant 4 : index
    %c0_8 = arith.constant 0 : index
    %c0_9 = arith.constant 0 : index
    %18 = vector.load %arg6[%c4, %c0_8, %c0_9] : memref<8x32x2xf32, #tpu.memory_space<vmem>>, vector<1x32x2xf32>
    %19 = vector.shape_cast %18 : vector<1x32x2xf32> to vector<32x2xf32>
    %20 = arith.addf %15, %19 : vector<32x2xf32>
    %21 = arith.mulf %19, %19 : vector<32x2xf32>
    %22 = arith.addf %17, %21 : vector<32x2xf32>
    %c5 = arith.constant 5 : index
    %c0_10 = arith.constant 0 : index
    %c0_11 = arith.constant 0 : index
    %23 = vector.load %arg6[%c5, %c0_10, %c0_11] : memref<8x32x2xf32, #tpu.memory_space<vmem>>, vector<1x32x2xf32>
    %24 = vector.shape_cast %23 : vector<1x32x2xf32> to vector<32x2xf32>
    %25 = arith.addf %20, %24 : vector<32x2xf32>
    %26 = arith.mulf %24, %24 : vector<32x2xf32>
    %27 = arith.addf %22, %26 : vector<32x2xf32>
    %c6 = arith.constant 6 : index
    %c0_12 = arith.constant 0 : index
    %c0_13 = arith.constant 0 : index
    %28 = vector.load %arg6[%c6, %c0_12, %c0_13] : memref<8x32x2xf32, #tpu.memory_space<vmem>>, vector<1x32x2xf32>
    %29 = vector.shape_cast %28 : vector<1x32x2xf32> to vector<32x2xf32>
    %30 = arith.addf %25, %29 : vector<32x2xf32>
    %31 = arith.mulf %29, %29 : vector<32x2xf32>
    %32 = arith.addf %27, %31 : vector<32x2xf32>
    %c7 = arith.constant 7 : index
    %c0_14 = arith.constant 0 : index
    %c0_15 = arith.constant 0 : index
    %33 = vector.load %arg6[%c7, %c0_14, %c0_15] : memref<8x32x2xf32, #tpu.memory_space<vmem>>, vector<1x32x2xf32>
    %34 = vector.shape_cast %33 : vector<1x32x2xf32> to vector<32x2xf32>
    %35 = arith.addf %30, %34 : vector<32x2xf32>
    %36 = arith.mulf %34, %34 : vector<32x2xf32>
    %37 = arith.addf %32, %36 : vector<32x2xf32>
    %c0_16 = arith.constant 0 : index
    %c0_17 = arith.constant 0 : index
    %38 = vector.load %arg4[%c0_16, %c0_17] : memref<8x2xf32, #tpu.memory_space<vmem>>, vector<1x2xf32>
    %c1_18 = arith.constant 1 : index
    %39 = memref.load %arg1[%c1_18] : memref<9xf32, #tpu.memory_space<smem>>
    %40 = vector.broadcast %39 : f32 to vector<1x2xf32>
    %41 = arith.mulf %38, %40 : vector<1x2xf32>
    %c0_19 = arith.constant 0 : index
    %42 = memref.load %arg2[%c0_19] : memref<1xf32, #tpu.memory_space<smem>>
    %43 = vector.broadcast %42 : f32 to vector<1x2xf32>
    %44 = arith.addf %41, %43 : vector<1x2xf32>
    %c1_20 = arith.constant 1 : index
    %c0_21 = arith.constant 0 : index
    %45 = vector.load %arg4[%c1_20, %c0_21] : memref<8x2xf32, #tpu.memory_space<vmem>>, vector<1x2xf32>
    %c2_22 = arith.constant 2 : index
    %46 = memref.load %arg1[%c2_22] : memref<9xf32, #tpu.memory_space<smem>>
    %47 = vector.broadcast %46 : f32 to vector<1x2xf32>
    %48 = arith.mulf %45, %47 : vector<1x2xf32>
    %49 = arith.addf %44, %48 : vector<1x2xf32>
    %c2_23 = arith.constant 2 : index
    %c0_24 = arith.constant 0 : index
    %50 = vector.load %arg4[%c2_23, %c0_24] : memref<8x2xf32, #tpu.memory_space<vmem>>, vector<1x2xf32>
    %c3_25 = arith.constant 3 : index
    %51 = memref.load %arg1[%c3_25] : memref<9xf32, #tpu.memory_space<smem>>
    %52 = vector.broadcast %51 : f32 to vector<1x2xf32>
    %53 = arith.mulf %50, %52 : vector<1x2xf32>
    %54 = arith.addf %49, %53 : vector<1x2xf32>
    %c3_26 = arith.constant 3 : index
    %c0_27 = arith.constant 0 : index
    %55 = vector.load %arg4[%c3_26, %c0_27] : memref<8x2xf32, #tpu.memory_space<vmem>>, vector<1x2xf32>
    %c4_28 = arith.constant 4 : index
    %56 = memref.load %arg1[%c4_28] : memref<9xf32, #tpu.memory_space<smem>>
    %57 = vector.broadcast %56 : f32 to vector<1x2xf32>
    %58 = arith.mulf %55, %57 : vector<1x2xf32>
    %59 = arith.addf %54, %58 : vector<1x2xf32>
    %c4_29 = arith.constant 4 : index
    %c0_30 = arith.constant 0 : index
    %60 = vector.load %arg4[%c4_29, %c0_30] : memref<8x2xf32, #tpu.memory_space<vmem>>, vector<1x2xf32>
    %c5_31 = arith.constant 5 : index
    %61 = memref.load %arg1[%c5_31] : memref<9xf32, #tpu.memory_space<smem>>
    %62 = vector.broadcast %61 : f32 to vector<1x2xf32>
    %63 = arith.mulf %60, %62 : vector<1x2xf32>
    %64 = arith.addf %59, %63 : vector<1x2xf32>
    %c5_32 = arith.constant 5 : index
    %c0_33 = arith.constant 0 : index
    %65 = vector.load %arg4[%c5_32, %c0_33] : memref<8x2xf32, #tpu.memory_space<vmem>>, vector<1x2xf32>
    %c6_34 = arith.constant 6 : index
    %66 = memref.load %arg1[%c6_34] : memref<9xf32, #tpu.memory_space<smem>>
    %67 = vector.broadcast %66 : f32 to vector<1x2xf32>
    %68 = arith.mulf %65, %67 : vector<1x2xf32>
    %69 = arith.addf %64, %68 : vector<1x2xf32>
    %c6_35 = arith.constant 6 : index
    %c0_36 = arith.constant 0 : index
    %70 = vector.load %arg4[%c6_35, %c0_36] : memref<8x2xf32, #tpu.memory_space<vmem>>, vector<1x2xf32>
    %c7_37 = arith.constant 7 : index
    %71 = memref.load %arg1[%c7_37] : memref<9xf32, #tpu.memory_space<smem>>
    %72 = vector.broadcast %71 : f32 to vector<1x2xf32>
    %73 = arith.mulf %70, %72 : vector<1x2xf32>
    %74 = arith.addf %69, %73 : vector<1x2xf32>
    %c7_38 = arith.constant 7 : index
    %c0_39 = arith.constant 0 : index
    %75 = vector.load %arg4[%c7_38, %c0_39] : memref<8x2xf32, #tpu.memory_space<vmem>>, vector<1x2xf32>
    %c8 = arith.constant 8 : index
    %76 = memref.load %arg1[%c8] : memref<9xf32, #tpu.memory_space<smem>>
    %77 = vector.broadcast %76 : f32 to vector<1x2xf32>
    %78 = arith.mulf %75, %77 : vector<1x2xf32>
    %79 = arith.addf %74, %78 : vector<1x2xf32>
    %c0_40 = arith.constant 0 : index
    %80 = memref.load %arg1[%c0_40] : memref<9xf32, #tpu.memory_space<smem>>
    %c0_41 = arith.constant 0 : index
    %c0_42 = arith.constant 0 : index
    %c0_43 = arith.constant 0 : index
    %81 = vector.load %arg5[%c0_41, %c0_42, %c0_43] : memref<4x32x2xf32, #tpu.memory_space<vmem>>, vector<1x32x2xf32>
    %82 = vector.shape_cast %81 : vector<1x32x2xf32> to vector<32x2xf32>
    %83 = arith.addf %35, %82 : vector<32x2xf32>
    %84 = arith.mulf %83, %83 : vector<32x2xf32>
    %85 = arith.subf %84, %37 : vector<32x2xf32>
    %86 = arith.mulf %82, %82 : vector<32x2xf32>
    %87 = arith.subf %85, %86 : vector<32x2xf32>
    %cst = arith.constant dense<0.000000e+00> : vector<2xf32>
    %88 = vector.multi_reduction <add>, %87, %cst [0] : vector<32x2xf32> to vector<2xf32>
    %89 = vector.shape_cast %88 : vector<2xf32> to vector<1x2xf32>
    %cst_44 = arith.constant 5.000000e-01 : f32
    %90 = vector.broadcast %cst_44 : f32 to vector<1x2xf32>
    %91 = arith.mulf %90, %89 : vector<1x2xf32>
    %c0_45 = arith.constant 0 : index
    %c0_46 = arith.constant 0 : index
    %92 = vector.load %arg3[%c0_45, %c0_46] : memref<4x2xf32, #tpu.memory_space<vmem>>, vector<1x2xf32>
    %93 = vector.broadcast %80 : f32 to vector<1x2xf32>
    %94 = arith.mulf %92, %93 : vector<1x2xf32>
    %95 = arith.addf %94, %79 : vector<1x2xf32>
    %96 = arith.addf %95, %91 : vector<1x2xf32>
    %c0_47 = arith.constant 0 : index
    %c0_48 = arith.constant 0 : index
    %97 = vector.load %arg7[%c0_47, %c0_48] : memref<4x2xf32, #tpu.memory_space<vmem>>, vector<1x2xf32>
    tpu.vector_store %arg7[%c0_47, %c0_48], %96 {strides = array<i32>} : memref<4x2xf32, #tpu.memory_space<vmem>>, vector<1x2xf32>,
    %c1_49 = arith.constant 1 : index
    %c0_50 = arith.constant 0 : index
    %c0_51 = arith.constant 0 : index
    %98 = vector.load %arg5[%c1_49, %c0_50, %c0_51] : memref<4x32x2xf32, #tpu.memory_space<vmem>>, vector<1x32x2xf32>
    %99 = vector.shape_cast %98 : vector<1x32x2xf32> to vector<32x2xf32>
    %100 = arith.addf %35, %99 : vector<32x2xf32>
    %101 = arith.mulf %100, %100 : vector<32x2xf32>
    %102 = arith.subf %101, %37 : vector<32x2xf32>
    %103 = arith.mulf %99, %99 : vector<32x2xf32>
    %104 = arith.subf %102, %103 : vector<32x2xf32>
    %cst_52 = arith.constant dense<0.000000e+00> : vector<2xf32>
    %105 = vector.multi_reduction <add>, %104, %cst_52 [0] : vector<32x2xf32> to vector<2xf32>
    %106 = vector.shape_cast %105 : vector<2xf32> to vector<1x2xf32>
    %cst_53 = arith.constant 5.000000e-01 : f32
    %107 = vector.broadcast %cst_53 : f32 to vector<1x2xf32>
    %108 = arith.mulf %107, %106 : vector<1x2xf32>
    %c1_54 = arith.constant 1 : index
    %c0_55 = arith.constant 0 : index
    %109 = vector.load %arg3[%c1_54, %c0_55] : memref<4x2xf32, #tpu.memory_space<vmem>>, vector<1x2xf32>
    %110 = vector.broadcast %80 : f32 to vector<1x2xf32>
    %111 = arith.mulf %109, %110 : vector<1x2xf32>
    %112 = arith.addf %111, %79 : vector<1x2xf32>
    %113 = arith.addf %112, %108 : vector<1x2xf32>
    %c1_56 = arith.constant 1 : index
    %c0_57 = arith.constant 0 : index
    %114 = vector.load %arg7[%c1_56, %c0_57] : memref<4x2xf32, #tpu.memory_space<vmem>>, vector<1x2xf32>
    tpu.vector_store %arg7[%c1_56, %c0_57], %113 {strides = array<i32>} : memref<4x2xf32, #tpu.memory_space<vmem>>, vector<1x2xf32>,
    %c2_58 = arith.constant 2 : index
    %c0_59 = arith.constant 0 : index
    %c0_60 = arith.constant 0 : index
    %115 = vector.load %arg5[%c2_58, %c0_59, %c0_60] : memref<4x32x2xf32, #tpu.memory_space<vmem>>, vector<1x32x2xf32>
    %116 = vector.shape_cast %115 : vector<1x32x2xf32> to vector<32x2xf32>
    %117 = arith.addf %35, %116 : vector<32x2xf32>
    %118 = arith.mulf %117, %117 : vector<32x2xf32>
    %119 = arith.subf %118, %37 : vector<32x2xf32>
    %120 = arith.mulf %116, %116 : vector<32x2xf32>
    %121 = arith.subf %119, %120 : vector<32x2xf32>
    %cst_61 = arith.constant dense<0.000000e+00> : vector<2xf32>
    %122 = vector.multi_reduction <add>, %121, %cst_61 [0] : vector<32x2xf32> to vector<2xf32>
    %123 = vector.shape_cast %122 : vector<2xf32> to vector<1x2xf32>
    %cst_62 = arith.constant 5.000000e-01 : f32
    %124 = vector.broadcast %cst_62 : f32 to vector<1x2xf32>
    %125 = arith.mulf %124, %123 : vector<1x2xf32>
    %c2_63 = arith.constant 2 : index
    %c0_64 = arith.constant 0 : index
    %126 = vector.load %arg3[%c2_63, %c0_64] : memref<4x2xf32, #tpu.memory_space<vmem>>, vector<1x2xf32>
    %127 = vector.broadcast %80 : f32 to vector<1x2xf32>
    %128 = arith.mulf %126, %127 : vector<1x2xf32>
    %129 = arith.addf %128, %79 : vector<1x2xf32>
    %130 = arith.addf %129, %125 : vector<1x2xf32>
    %c2_65 = arith.constant 2 : index
    %c0_66 = arith.constant 0 : index
    %131 = vector.load %arg7[%c2_65, %c0_66] : memref<4x2xf32, #tpu.memory_space<vmem>>, vector<1x2xf32>
    tpu.vector_store %arg7[%c2_65, %c0_66], %130 {strides = array<i32>} : memref<4x2xf32, #tpu.memory_space<vmem>>, vector<1x2xf32>,
    %c3_67 = arith.constant 3 : index
    %c0_68 = arith.constant 0 : index
    %c0_69 = arith.constant 0 : index
    %132 = vector.load %arg5[%c3_67, %c0_68, %c0_69] : memref<4x32x2xf32, #tpu.memory_space<vmem>>, vector<1x32x2xf32>
    %133 = vector.shape_cast %132 : vector<1x32x2xf32> to vector<32x2xf32>
    %134 = arith.addf %35, %133 : vector<32x2xf32>
    %135 = arith.mulf %134, %134 : vector<32x2xf32>
    %136 = arith.subf %135, %37 : vector<32x2xf32>
    %137 = arith.mulf %133, %133 : vector<32x2xf32>
    %138 = arith.subf %136, %137 : vector<32x2xf32>
    %cst_70 = arith.constant dense<0.000000e+00> : vector<2xf32>
    %139 = vector.multi_reduction <add>, %138, %cst_70 [0] : vector<32x2xf32> to vector<2xf32>
    %140 = vector.shape_cast %139 : vector<2xf32> to vector<1x2xf32>
    %cst_71 = arith.constant 5.000000e-01 : f32
    %141 = vector.broadcast %cst_71 : f32 to vector<1x2xf32>
    %142 = arith.mulf %141, %140 : vector<1x2xf32>
    %c3_72 = arith.constant 3 : index
    %c0_73 = arith.constant 0 : index
    %143 = vector.load %arg3[%c3_72, %c0_73] : memref<4x2xf32, #tpu.memory_space<vmem>>, vector<1x2xf32>
    %144 = vector.broadcast %80 : f32 to vector<1x2xf32>
    %145 = arith.mulf %143, %144 : vector<1x2xf32>
    %146 = arith.addf %145, %79 : vector<1x2xf32>
    %147 = arith.addf %146, %142 : vector<1x2xf32>
    %c3_74 = arith.constant 3 : index
    %c0_75 = arith.constant 0 : index
    %148 = vector.load %arg7[%c3_74, %c0_75] : memref<4x2xf32, #tpu.memory_space<vmem>>, vector<1x2xf32>
    tpu.vector_store %arg7[%c3_74, %c0_75], %147 {strides = array<i32>} : memref<4x2xf32, #tpu.memory_space<vmem>>, vector<1x2xf32>,
    return
  }
  func.func @transform_0(%arg0: i32) -> i32 {
    %c0_i32 = arith.constant 0 : i32
    %c0_i32_0 = arith.constant 0 : i32
    return %c0_i32 : i32
  }
  func.func @transform_1(%arg0: i32) -> i32 {
    %c0_i32 = arith.constant 0 : i32
    %c0_i32_0 = arith.constant 0 : i32
    return %c0_i32 : i32
  }
  func.func @transform_2(%arg0: i32) -> (i32, i32) {
    %c0_i32 = arith.constant 0 : i32
    %c0_i32_0 = arith.constant 0 : i32
    return %c0_i32, %arg0 : i32, i32
  }
  func.func @transform_3(%arg0: i32) -> (i32, i32) {
    %c0_i32 = arith.constant 0 : i32
    %c0_i32_0 = arith.constant 0 : i32
    return %c0_i32, %arg0 : i32, i32
  }
  func.func @transform_4(%arg0: i32) -> (i32, i32, i32) {
    %c0_i32 = arith.constant 0 : i32
    %c0_i32_0 = arith.constant 0 : i32
    %c0_i32_1 = arith.constant 0 : i32
    return %c0_i32, %c0_i32_0, %arg0 : i32, i32, i32
  }
  func.func @transform_5(%arg0: i32) -> (i32, i32, i32) {
    %c0_i32 = arith.constant 0 : i32
    %c0_i32_0 = arith.constant 0 : i32
    %c0_i32_1 = arith.constant 0 : i32
    return %c0_i32, %c0_i32_0, %arg0 : i32, i32, i32
  }
  func.func @transform_6(%arg0: i32) -> (i32, i32) {
    %c0_i32 = arith.constant 0 : i32
    %c0_i32_0 = arith.constant 0 : i32
    return %c0_i32, %arg0 : i32, i32
  }
}

</mosaic_0001>

<bundles_post_ra>
// kernel: tpu_custom_call.1
= control target key start
LH: loop header
LB: loop body
LE: loop exit
PB: predicated region body
PF: predicated region fallthrough
CT: control target
= control target key end

     0   :  { %12 = vsyncpa [#allocation4], 0  ;;  %s794_s0 = inlined_call_operand.vmem [shape: f32[9], index: 0, kind: input, shape index: {}]   ;;  %s795_s1 = inlined_call_operand.<no memory space> [shape: f32[1], index: 1, kind: input, shape index: {}]   ;;  %s796_s2 = inlined_call_operand.vmem [shape: f32[4,2], index: 2, kind: input, shape index: {}]   ;;  %s797_s3 = inlined_call_operand.vmem [shape: f32[8,2], index: 3, kind: input, shape index: {}]   ;;  %s798_s4 = inlined_call_operand.vmem [shape: f32[4,32,2], index: 4, kind: input, shape index: {}]   ;;  %s799_s5 = inlined_call_operand.vmem [shape: f32[8,32,2], index: 5, kind: input, shape index: {}]   ;;  %s800_s6 = inlined_call_operand.vmem [shape: f32[4,2], index: 6, kind: output, shape index: {}]  }
   0x1   :  { %s19_s23 = sshll.u32 %s794_s0, 4  ;;  %s20_s23 = int_to_ptr.vmem [resolvable:$true] %s19_s23 }
   0x2   :  { %s439_s24 = scalar_lea.vmem %s20_s23, 16  ;;  %p444_p1 = scmp.lt.s32.totalorder %s20_s23, %s20_s23 }
   0x3   :  { %p440_p0 = scmp.ne.s32.totalorder %s20_s23, %s439_s24  ;;  %p445_p2 = scmp.lt.s32.totalorder %s439_s24, %s439_s24 }
   0x5   :  { %p446_p3 = por %p445_p2, %p444_p1 }
   0x7   :  { %p447_p4 = pnand %p446_p3, %p440_p0 }
   0x9   :  { %450 = shalt.err (!%p447_p4)
}
   0xa   :  { %s453_s25 = smov [#allocation3]  }
   0xb   :  { %22 = dma.vmem_to_smem %s20_s23, 16, %s453_s25, [#allocation4]  }
   0xc   :  { %451 = dma.done.wait [#allocation4], 16  }
   0xd   :  { %452 = vsyncadd [#allocation4], 4294967280 }
   0xe   :  { %36 = sfence }
   0xf   :  { %v37_v0 = vld [vmem:[%s799_s5] sm:$0xff]  ;;  %v38_v1 = vld [vmem:[%s799_s5 + $0x8] sm:$0xff]  ;;  %v39_v2 = vld [vmem:[%s799_s5 + $0x10] sm:$0xff]  ;;  %s573_s0 = sld [smem:[#allocation3 + $0x1]]  ;;  %s575_s30 = sld [smem:[#allocation3 + $0x2]]  ;;  %vm231_vm0 = vcmask 15360  }
  0x10   :  { %v40_v3 = vld [vmem:[%s799_s5 + $0x18] sm:$0xff]  ;;  %v41_v4 = vmul.f32 %v37_v0, %v37_v0  ;;  %v42_v5 = vmul.f32 %v38_v1, %v38_v1  ;;  %v43_v6 = vmul.f32 %v39_v2, %v39_v2  ;;  %v390_v7 = vld [vmem:[%s799_s5 + $0x20] sm:$0xff]  ;;  %v391_v8 = vld [vmem:[%s799_s5 + $0x28] sm:$0xff]  ;;  %s577_s7 = sld [smem:[#allocation3 + $0x3]]  ;;  %s588_s14 = sld [smem:[#allocation3 + $0x4]]  ;;  %vm251_vm1 = vcmask 8192  }
  0x11   :  { %v44_v9 = vmul.f32 %v40_v3, %v40_v3  ;;  %v392_v10 = vld [vmem:[%s799_s5 + $0x30] sm:$0xff]  ;;  %v393_v11 = vld [vmem:[%s799_s5 + $0x38] sm:$0xff]  ;;  %v50_v12 = vadd.f32 %v390_v7, %v37_v0  ;;  %v51_v13 = vadd.f32 %v391_v8, %v38_v1  ;;  %v54_v14 = vmul.f32 %v390_v7, %v390_v7  ;;  %v394_v15 = vld [vmem:[%s799_s5 + $0x40] sm:$0xff]  ;;  %s596_s19 = sld [smem:[#allocation3 + $0x5]]  ;;  %s598_s20 = sld [smem:[#allocation3 + $0x6]] }
  0x12   :  { %v52_v16 = vadd.f32 %v392_v10, %v39_v2  ;;  %v53_v17 = vadd.f32 %v393_v11, %v40_v3  ;;  %v55_v18 = vmul.f32 %v391_v8, %v391_v8  ;;  %v56_v19 = vmul.f32 %v392_v10, %v392_v10  ;;  %v395_v20 = vld [vmem:[%s799_s5 + $0x48] sm:$0xff]  ;;  %v396_v21 = vld [vmem:[%s799_s5 + $0x50] sm:$0xff]  ;;  %v397_v22 = vld [vmem:[%s799_s5 + $0x58] sm:$0xff]  ;;  %s600_s21 = sld [smem:[#allocation3 + $0x7]]  ;;  %s606_s22 = sld [smem:[#allocation3 + $0x8]] }
  0x13   :  { %v57_v23 = vmul.f32 %v393_v11, %v393_v11  ;;  %v58_v24 = vadd.f32 %v54_v14, %v41_v4  ;;  %v67_v25 = vadd.f32 %v394_v15, %v50_v12  ;;  %v68_v26 = vadd.f32 %v395_v20, %v51_v13  ;;  %v398_v27 = vld [vmem:[%s799_s5 + $0x60] sm:$0xff]  ;;  %v399_v28 = vld [vmem:[%s799_s5 + $0x68] sm:$0xff]  ;;  %v400_v29 = vld [vmem:[%s799_s5 + $0x70] sm:$0xff]  ;;  %s648_s12 = sld [smem:[#allocation3]] }
  0x14   :  { %v59_v30 = vadd.f32 %v55_v18, %v42_v5  ;;  %v60_v31 = vadd.f32 %v56_v19, %v43_v6  ;;  %v69_v32 = vadd.f32 %v396_v21, %v52_v16  ;;  %v70_v33 = vadd.f32 %v397_v22, %v53_v17  ;;  %v401_v34 = vld [vmem:[%s799_s5 + $0x78] sm:$0xff]  ;;  %v402_v43 = vld [vmem:[%s799_s5 + $0x80] sm:$0xff]  ;;  %v403_v44 = vld [vmem:[%s799_s5 + $0x88] sm:$0xff] }
  0x15   :  { %v61_v35 = vadd.f32 %v57_v23, %v44_v9  ;;  %v71_v36 = vmul.f32 %v394_v15, %v394_v15  ;;  %v72_v37 = vmul.f32 %v395_v20, %v395_v20  ;;  %v73_v38 = vmul.f32 %v396_v21, %v396_v21  ;;  %v404_v45 = vld [vmem:[%s799_s5 + $0x90] sm:$0xff]  ;;  %v405_v50 = vld [vmem:[%s799_s5 + $0x98] sm:$0xff]  ;;  %v406_v59 = vld [vmem:[%s799_s5 + $0xa0] sm:$0xff] }
  0x16   :  { %v74_v39 = vmul.f32 %v397_v22, %v397_v22  ;;  %v84_v40 = vadd.f32 %v398_v27, %v67_v25  ;;  %v85_v41 = vadd.f32 %v399_v28, %v68_v26  ;;  %v86_v42 = vadd.f32 %v400_v29, %v69_v32  ;;  %v407_v60 = vld [vmem:[%s799_s5 + $0xa8] sm:$0xff]  ;;  %v408_v61 = vld [vmem:[%s799_s5 + $0xb0] sm:$0xff]  ;;  %v409_v2 = vld [vmem:[%s799_s5 + $0xb8] sm:$0xff] }
  0x17   :  { %v75_v46 = vadd.f32 %v71_v36, %v58_v24  ;;  %v76_v47 = vadd.f32 %v72_v37, %v59_v30  ;;  %v77_v48 = vadd.f32 %v73_v38, %v60_v31  ;;  %v87_v49 = vadd.f32 %v401_v34, %v70_v33  ;;  %v410_v11 = vld [vmem:[%s799_s5 + $0xc0] sm:$0xff]  ;;  %v411_v12 = vld [vmem:[%s799_s5 + $0xc8] sm:$0xff]  ;;  %v412_v13 = vld [vmem:[%s799_s5 + $0xd0] sm:$0xff] }
  0x18   :  { %v78_v51 = vadd.f32 %v74_v39, %v61_v35  ;;  %v88_v52 = vmul.f32 %v398_v27, %v398_v27  ;;  %v89_v53 = vmul.f32 %v399_v28, %v399_v28  ;;  %v90_v54 = vmul.f32 %v400_v29, %v400_v29  ;;  %v413_v23 = vld [vmem:[%s799_s5 + $0xd8] sm:$0xff]  ;;  %v414_v27 = vld [vmem:[%s799_s5 + $0xe0] sm:$0xff]  ;;  %v415_v28 = vld [vmem:[%s799_s5 + $0xe8] sm:$0xff] }
  0x19   :  { %v91_v55 = vmul.f32 %v401_v34, %v401_v34  ;;  %v101_v56 = vadd.f32 %v402_v43, %v84_v40  ;;  %v102_v57 = vadd.f32 %v403_v44, %v85_v41  ;;  %v103_v58 = vadd.f32 %v404_v45, %v86_v42  ;;  %v416_v32 = vld [vmem:[%s799_s5 + $0xf0] sm:$0xff] }
  0x1a   :  { %v92_v62 = vadd.f32 %v88_v52, %v75_v46  ;;  %v93_v63 = vadd.f32 %v89_v53, %v76_v47  ;;  %v94_v0 = vadd.f32 %v90_v54, %v77_v48  ;;  %v104_v1 = vadd.f32 %v405_v50, %v87_v49  ;;  %v164_v47 = vld [vmem:[%s797_s3] sm:$0x1]  ;;  %v171_v52 = vld [vmem:[%s797_s3 + $0x1] sm:$0x1] }
  0x1b   :  { %v95_v3 = vadd.f32 %v91_v55, %v78_v51  ;;  %v105_v4 = vmul.f32 %v402_v43, %v402_v43  ;;  %v106_v5 = vmul.f32 %v403_v44, %v403_v44  ;;  %v107_v6 = vmul.f32 %v404_v45, %v404_v45  ;;  %v417_v45 = vld [vmem:[%s799_s5 + $0xf8] sm:$0xff] }
  0x1c   :  { %v108_v7 = vmul.f32 %v405_v50, %v405_v50  ;;  %v118_v8 = vadd.f32 %v406_v59, %v101_v56  ;;  %v119_v9 = vadd.f32 %v407_v60, %v102_v57  ;;  %v120_v10 = vadd.f32 %v408_v61, %v103_v58  ;;  %v176_v56 = vld [vmem:[%s797_s3 + $0x2] sm:$0x1] }
  0x1d   :  { %v109_v14 = vadd.f32 %v105_v4, %v92_v62  ;;  %v110_v15 = vadd.f32 %v106_v5, %v93_v63  ;;  %v111_v16 = vadd.f32 %v107_v6, %v94_v0  ;;  %v121_v17 = vadd.f32 %v409_v2, %v104_v1  ;;  %v181_v62 = vld [vmem:[%s797_s3 + $0x3] sm:$0x1]  ;;  %v186_v63 = vld [vmem:[%s797_s3 + $0x4] sm:$0x1]  ;;  %v191_v0 = vld [vmem:[%s797_s3 + $0x5] sm:$0x1] }
  0x1e   :  { %v112_v18 = vadd.f32 %v108_v7, %v95_v3  ;;  %v122_v19 = vmul.f32 %v406_v59, %v406_v59  ;;  %v123_v20 = vmul.f32 %v407_v60, %v407_v60  ;;  %v124_v21 = vmul.f32 %v408_v61, %v408_v61  ;;  %v196_v5 = vld [vmem:[%s797_s3 + $0x6] sm:$0x1]  ;;  %v208_v7 = vld [vmem:[%s798_s4 + $0x8] sm:$0xff] }
  0x1f   :  { %v125_v22 = vmul.f32 %v409_v2, %v409_v2  ;;  %v135_v24 = vadd.f32 %v410_v11, %v118_v8  ;;  %v136_v25 = vadd.f32 %v411_v12, %v119_v9  ;;  %v137_v26 = vadd.f32 %v412_v13, %v120_v10  ;;  %v207_v6 = vld [vmem:[%s798_s4] sm:$0xff] }
  0x20   :  { %v126_v29 = vadd.f32 %v122_v19, %v109_v14  ;;  %v127_v30 = vadd.f32 %v123_v20, %v110_v15  ;;  %v128_v31 = vadd.f32 %v124_v21, %v111_v16  ;;  %v169_v33 = vstv %s795_s1 }
  0x21   :  { %v129_v34 = vadd.f32 %v125_v22, %v112_v18  ;;  %v139_v35 = vmul.f32 %v410_v11, %v410_v11  ;;  %v140_v36 = vmul.f32 %v411_v12, %v411_v12  ;;  %v141_v37 = vmul.f32 %v412_v13, %v412_v13  ;;  %v209_v12 = vld [vmem:[%s798_s4 + $0x10] sm:$0xff]  ;;  %v210_v13 = vld [vmem:[%s798_s4 + $0x18] sm:$0xff]  ;;  %v201_v22 = vld [vmem:[%s797_s3 + $0x7] sm:$0x1] }
  0x22   :  { %v138_v38 = vadd.f32 %v413_v23, %v121_v17  ;;  %v142_v39 = vmul.f32 %v413_v23, %v413_v23  ;;  %v602_v40 = vadd.f32 %v414_v27, %v135_v24  ;;  %v604_v41 = vadd.f32 %v415_v28, %v136_v25 }
  0x23   :  { %v143_v42 = vadd.f32 %v139_v35, %v126_v29  ;;  %v144_v43 = vadd.f32 %v140_v36, %v127_v30  ;;  %v145_v44 = vadd.f32 %v141_v37, %v128_v31  ;;  %v611_v46 = vadd.f32 %v416_v32, %v137_v26  ;;  %v427_v36 = vld [vmem:[%s798_s4 + $0x28] sm:$0xff]  ;;  %v428_v37 = vld [vmem:[%s798_s4 + $0x30] sm:$0xff] }
  0x24   :  { %v146_v48 = vadd.f32 %v142_v39, %v129_v34  ;;  %v156_v49 = vmul.f32 %v414_v27, %v414_v27  ;;  %v157_v50 = vmul.f32 %v415_v28, %v415_v28  ;;  %v158_v51 = vmul.f32 %v416_v32, %v416_v32  ;;  %v426_v27 = vld [vmem:[%s798_s4 + $0x20] sm:$0xff] }
  0x25   :  { %v159_v53 = vmul.f32 %v417_v45, %v417_v45  ;;  %v166_v54 = vstv %s573_s0  ;;  %v173_v55 = vstv %s575_s30  ;;  %v178_v57 = vstv %s577_s7 }
  0x26   :  { %v625_v58 = vadd.f32 %v417_v45, %v138_v38  ;;  %v627_v59 = vadd.f32 %v156_v49, %v143_v42  ;;  %v629_v60 = vadd.f32 %v157_v50, %v144_v43  ;;  %v167_v61 = vmul.f32 %v166_v54, %v164_v47  ;;  %v429_v43 = vld [vmem:[%s798_s4 + $0x38] sm:$0xff] }
  0x27   :  { %v640_v1 = vadd.f32 %v158_v51, %v145_v44  ;;  %v642_v2 = vadd.f32 %v159_v53, %v146_v48  ;;  %v174_v3 = vmul.f32 %v173_v55, %v171_v52  ;;  %v183_v4 = vstv %s588_s14 }
  0x28   :  { %v170_v8 = vadd.f32 %v169_v33, %v167_v61  ;;  %v179_v9 = vmul.f32 %v178_v57, %v176_v56  ;;  %v188_v10 = vstv %s596_s19  ;;  %v193_v11 = vstv %s598_s20 }
  0x29   :  { %v184_v14 = vmul.f32 %v183_v4, %v181_v62  ;;  %v189_v15 = vmul.f32 %v188_v10, %v186_v63  ;;  %v194_v16 = vmul.f32 %v193_v11, %v191_v0  ;;  %v198_v17 = vstv %s600_s21  ;;  %v246_v11 = vld [vmem:[%s796_s2] sm:$0x1] }
  0x2a   :  { %v175_v18 = vadd.f32 %v174_v3, %v170_v8  ;;  %v199_v19 = vmul.f32 %v198_v17, %v196_v5  ;;  %v203_v20 = vstv %s606_s22  ;;  %v211_v21 = vadd.f32 %v207_v6, %v602_v40 }
  0x2b   :  { %v212_v23 = vadd.f32 %v208_v7, %v604_v41  ;;  %v213_v24 = vadd.f32 %v209_v12, %v611_v46  ;;  %v214_v25 = vadd.f32 %v210_v13, %v625_v58  ;;  %v223_v26 = vmul.f32 %v207_v6, %v207_v6 }
  0x2c   :  { %v180_v28 = vadd.f32 %v179_v9, %v175_v18  ;;  %v215_v29 = vmul.f32 %v211_v21, %v211_v21  ;;  %v224_v30 = vmul.f32 %v208_v7, %v208_v7  ;;  %v225_v31 = vmul.f32 %v209_v12, %v209_v12 }
  0x2d   :  { %v216_v32 = vmul.f32 %v212_v23, %v212_v23  ;;  %v217_v33 = vmul.f32 %v213_v24, %v213_v24  ;;  %v218_v34 = vmul.f32 %v214_v25, %v214_v25  ;;  %v226_v35 = vmul.f32 %v210_v13, %v210_v13  ;;  %v431_v23 = vld [vmem:[%s798_s4 + $0x48] sm:$0xff] }
  0x2e   :  { %v185_v38 = vadd.f32 %v184_v14, %v180_v28  ;;  %v204_v39 = vmul.f32 %v203_v20, %v201_v22  ;;  %v219_v42 = vsub.f32 %v215_v29, %v627_v59  ;;  %v258_v44 = vadd.f32 %v426_v27, %v602_v40  ;;  %v433_v28 = vld [vmem:[%s798_s4 + $0x58] sm:$0xff] }
  0x2f   :  { %v220_v45 = vsub.f32 %v216_v32, %v629_v60  ;;  %v221_v47 = vsub.f32 %v217_v33, %v640_v1  ;;  %v222_v48 = vsub.f32 %v218_v34, %v642_v2  ;;  %v691_v49 = vstv %s648_s12 }
  0x30   :  { %v190_v50 = vadd.f32 %v189_v15, %v185_v38  ;;  %v227_v51 = vsub.f32 %v219_v42, %v223_v26  ;;  %v259_v52 = vadd.f32 %v427_v36, %v604_v41  ;;  %v260_v53 = vadd.f32 %v428_v37, %v611_v46 }
  0x31   :  { %v228_v54 = vsub.f32 %v220_v45, %v224_v30  ;;  %v229_v55 = vsub.f32 %v221_v47, %v225_v31  ;;  %v230_v56 = vsub.f32 %v222_v48, %v226_v35  ;;  %v261_v57 = vadd.f32 %v429_v43, %v625_v58 }
  0x32   :  { %v195_v61 = vadd.f32 %v194_v16, %v190_v50  ;;  %v232_v62 = vsel %vm231_vm0, %v227_v51, 0.0  ;;  %v262_v63 = vmul.f32 %v258_v44, %v258_v44  ;;  %v263_v0 = vmul.f32 %v259_v52, %v259_v52  ;;  %v430_v16 = vld [vmem:[%s798_s4 + $0x40] sm:$0xff] }
  0x33   :  { %v233_v3 = vsel %vm231_vm0, %v228_v54, 0.0  ;;  %v235_v4 = vsel %vm231_vm0, %v229_v55, 0.0  ;;  %v237_v5 = vsel %vm231_vm0, %v230_v56, 0.0  ;;  %v264_v6 = vmul.f32 %v260_v53, %v260_v53  ;;  %v292_v50 = vld [vmem:[%s796_s2 + $0x1] sm:$0x1] }
  0x34   :  { %v200_v7 = vadd.f32 %v199_v19, %v195_v61  ;;  %v234_v8 = vadd.f32 %v233_v3, %v232_v62  ;;  %v265_v9 = vmul.f32 %v261_v57, %v261_v57  ;;  %v266_v10 = vsub.f32 %v262_v63, %v627_v59  ;;  %v434_v62 = vld [vmem:[%s798_s4 + $0x60] sm:$0xff] }
  0x35   :  { %v267_v12 = vsub.f32 %v263_v0, %v629_v60  ;;  %v268_v13 = vsub.f32 %v264_v6, %v640_v1  ;;  %v270_v14 = vmul.f32 %v426_v27, %v426_v27  ;;  %v271_v15 = vmul.f32 %v427_v36, %v427_v36  ;;  %v432_v27 = vld [vmem:[%s798_s4 + $0x50] sm:$0xff] }
  0x36   :  { %v236_v17 = vadd.f32 %v235_v4, %v234_v8  ;;  %v269_v18 = vsub.f32 %v265_v9, %v642_v2  ;;  %v272_v19 = vmul.f32 %v428_v37, %v428_v37  ;;  %v273_v20 = vmul.f32 %v429_v43, %v429_v43  ;;  %v435_v9 = vld [vmem:[%s798_s4 + $0x68] sm:$0xff] }
  0x37   :  { %v274_v21 = vsub.f32 %v266_v10, %v270_v14  ;;  %v275_v22 = vsub.f32 %v267_v12, %v271_v15  ;;  %v248_v25 = vmul.f32 %v691_v49, %v246_v11  ;;  %v302_v29 = vadd.f32 %v430_v16, %v602_v40  ;;  %v437_v14 = vld [vmem:[%s798_s4 + $0x78] sm:$0xff] }
  0x38   :  { %v238_v24 = vadd.f32 %v237_v5, %v236_v17  ;;  %v276_v26 = vsub.f32 %v268_v13, %v272_v19  ;;  %v721_v30 = vadd.f32 %v204_v39, %v200_v7  ;;  %v277_v31 = vsub.f32 %v269_v18, %v273_v20  ;;  %v436_v13 = vld [vmem:[%s798_s4 + $0x70] sm:$0xff] }
  0x39   :  { %v278_v32 = vsel %vm231_vm0, %v274_v21, 0.0  ;;  %v279_v33 = vsel %vm231_vm0, %v275_v22, 0.0  ;;  %v303_v37 = vadd.f32 %v431_v23, %v604_v41  ;;  %v304_v42 = vadd.f32 %v432_v27, %v611_v46 }
  0x3a   :  { %v239_v34 = vrot.slane %v238_v24, 4  ;;  %v280_v35 = vadd.f32 %v279_v33, %v278_v32  ;;  %v281_v36 = vsel %vm231_vm0, %v276_v26, 0.0  ;;  %v283_v38 = vsel %vm231_vm0, %v277_v31, 0.0 }
  0x3b   :  { %v305_v43 = vadd.f32 %v433_v28, %v625_v58  ;;  %v306_v44 = vmul.f32 %v302_v29, %v302_v29  ;;  %v307_v47 = vmul.f32 %v303_v37, %v303_v37  ;;  %v314_v48 = vmul.f32 %v430_v16, %v430_v16 }
  0x3c   :  { %v240_v39 = vadd.f32 %v239_v34, %v238_v24  ;;  %v282_v45 = vadd.f32 %v281_v36, %v280_v35  ;;  %v308_v51 = vmul.f32 %v304_v42, %v304_v42  ;;  %v315_v54 = vmul.f32 %v431_v23, %v431_v23 }
  0x3d   :  { %v309_v52 = vmul.f32 %v305_v43, %v305_v43  ;;  %v310_v53 = vsub.f32 %v306_v44, %v627_v59  ;;  %v311_v57 = vsub.f32 %v307_v47, %v629_v60  ;;  %v316_v61 = vmul.f32 %v432_v27, %v432_v27 }
  0x3e   :  { %v241_v55 = vrot.slane %v240_v39, 2  ;;  %v284_v56 = vadd.f32 %v283_v38, %v282_v45  ;;  %v312_v63 = vsub.f32 %v308_v51, %v640_v1  ;;  %v317_v3 = vmul.f32 %v433_v28, %v433_v28 }
  0x3f   :  { %v313_v0 = vsub.f32 %v309_v52, %v642_v2  ;;  %v318_v4 = vsub.f32 %v310_v53, %v314_v48  ;;  %v293_v7 = vmul.f32 %v292_v50, %v691_v49  ;;  %v319_v8 = vsub.f32 %v311_v57, %v315_v54 }
  0x40   :  { %v242_v5 = vadd.f32 %v241_v55, %v240_v39  ;;  %v285_v6 = vrot.slane %v284_v56, 4  ;;  %v320_v10 = vsub.f32 %v312_v63, %v316_v61  ;;  %v346_v15 = vadd.f32 %v434_v62, %v602_v40 }
  0x41   :  { %v321_v11 = vsub.f32 %v313_v0, %v317_v3  ;;  %v322_v12 = vsel %vm231_vm0, %v318_v4, 0.0  ;;  %v249_v17 = vadd.f32 %v248_v25, %v721_v30  ;;  %v323_v19 = vsel %vm231_vm0, %v319_v8, 0.0 }
  0x42   :  { %v243_v16 = vrot.slane %v242_v5, 1  ;;  %v286_v18 = vadd.f32 %v285_v6, %v284_v56  ;;  %v324_v20 = vadd.f32 %v323_v19, %v322_v12  ;;  %v325_v21 = vsel %vm231_vm0, %v320_v10, 0.0 }
  0x43   :  { %v327_v22 = vsel %vm231_vm0, %v321_v11, 0.0  ;;  %v347_v23 = vadd.f32 %v435_v9, %v604_v41  ;;  %v348_v27 = vadd.f32 %v436_v13, %v611_v46  ;;  %v349_v28 = vadd.f32 %v437_v14, %v625_v58  ;;  %v380_v11 = vld [vmem:[%s796_s2 + $0x3] sm:$0x1] }
  0x44   :  { %v244_v24 = vadd.f32 %v243_v16, %v242_v5  ;;  %v287_v26 = vrot.slane %v286_v18, 2  ;;  %v326_v40 = vadd.f32 %v325_v21, %v324_v20  ;;  %v350_v29 = vmul.f32 %v346_v15, %v346_v15 }
  0x45   :  { %v351_v31 = vmul.f32 %v347_v23, %v347_v23  ;;  %v358_v25 = vmul.f32 %v434_v62, %v434_v62  ;;  %v352_v34 = vmul.f32 %v348_v27, %v348_v27  ;;  %v353_v35 = vmul.f32 %v349_v28, %v349_v28 }
  0x46   :  { %v245_v32 = vmul.f32 0.5, %v244_v24  ;;  %v288_v33 = vadd.f32 %v287_v26, %v286_v18  ;;  %v328_v36 = vadd.f32 %v327_v22, %v326_v40  ;;  %v354_v37 = vsub.f32 %v350_v29, %v627_v59 }
  0x47   :  { %v355_v38 = vsub.f32 %v351_v31, %v629_v60  ;;  %v359_v41 = vmul.f32 %v435_v9, %v435_v9  ;;  %v356_v46 = vsub.f32 %v352_v34, %v640_v1  ;;  %v357_v58 = vsub.f32 %v353_v35, %v642_v2  ;;  %v336_v2 = vld [vmem:[%s796_s2 + $0x2] sm:$0x1] }
  0x48   :  { %v250_v42 = vadd.f32 %v249_v17, %v245_v32  ;;  %v289_v43 = vrot.slane %v288_v33, 1  ;;  %v329_v44 = vrot.slane %v328_v36, 4  ;;  %v360_v39 = vmul.f32 %v436_v13, %v436_v13 }
  0x49   :  { %v361_v45 = vmul.f32 %v437_v14, %v437_v14  ;;  %v362_v47 = vsub.f32 %v354_v37, %v358_v25  ;;  %v294_v59 = vadd.f32 %v293_v7, %v721_v30  ;;  %v363_v60 = vsub.f32 %v355_v38, %v359_v41 }
  0x4a   :  { %252 = vst.msk [vmem:[%s800_s6] sm:$0x1] %vm251_vm1, %v250_v42  ;;  %v290_v48 = vadd.f32 %v289_v43, %v288_v33  ;;  %v330_v50 = vadd.f32 %v329_v44, %v328_v36  ;;  %v364_v51 = vsub.f32 %v356_v46, %v360_v39  ;;  %v337_v0 = vmul.f32 %v336_v2, %v691_v49 }
  0x4b   :  { %v365_v52 = vsub.f32 %v357_v58, %v361_v45  ;;  %v366_v1 = vsel %vm231_vm0, %v362_v47, 0.0  ;;  %v367_v54 = vsel %vm231_vm0, %v363_v60, 0.0  ;;  %v381_v15 = vmul.f32 %v380_v11, %v691_v49 }
  0x4c   :  { %v291_v53 = vmul.f32 0.5, %v290_v48  ;;  %v331_v55 = vrot.slane %v330_v50, 2  ;;  %v368_v56 = vadd.f32 %v367_v54, %v366_v1  ;;  %v369_v57 = vsel %vm231_vm0, %v364_v51, 0.0 }
  0x4d   :  { %v371_v62 = vsel %vm231_vm0, %v365_v52, 0.0  ;;  %v338_v7 = vadd.f32 %v337_v0, %v721_v30  ;;  %v382_v18 = vadd.f32 %v381_v15, %v721_v30 }
  0x4e   :  { %v295_v61 = vadd.f32 %v294_v59, %v291_v53  ;;  %v332_v63 = vadd.f32 %v331_v55, %v330_v50  ;;  %v370_v3 = vadd.f32 %v369_v57, %v368_v56 }
  0x50   :  { %296 = vst.msk [vmem:[%s800_s6 + $0x1] sm:$0x1] %vm251_vm1, %v295_v61  ;;  %v333_v4 = vrot.slane %v332_v63, 1  ;;  %v372_v5 = vadd.f32 %v371_v62, %v370_v3 }
  0x52   :  { %v334_v6 = vadd.f32 %v333_v4, %v332_v63  ;;  %v373_v8 = vrot.slane %v372_v5, 4 }
  0x54   :  { %v335_v9 = vmul.f32 0.5, %v334_v6  ;;  %v374_v10 = vadd.f32 %v373_v8, %v372_v5 }
  0x56   :  { %v339_v12 = vadd.f32 %v338_v7, %v335_v9  ;;  %v375_v13 = vrot.slane %v374_v10, 2 }
  0x58   :  { %340 = vst.msk [vmem:[%s800_s6 + $0x2] sm:$0x1] %vm251_vm1, %v339_v12  ;;  %v376_v14 = vadd.f32 %v375_v13, %v374_v10 }
  0x5a   :  { %v377_v16 = vrot.slane %v376_v14, 1 }
  0x5c   :  { %v378_v17 = vadd.f32 %v377_v16, %v376_v14 }
  0x5e   :  { %v379_v19 = vmul.f32 0.5, %v378_v17 }
  0x60   :  { %v383_v20 = vadd.f32 %v382_v18, %v379_v19 }
  0x62   :  { %384 = vst.msk [vmem:[%s800_s6 + $0x3] sm:$0x1] %vm251_vm1, %v383_v20 }
  0x63   :  { %389 = vsyncpa [#allocation4], 1 }

</bundles_post_ra>
